<compile_context>
chip_gen: v7x
topology: tpu7x:2x2x1
jax: 0.10.0
libtpu: 0.0.40
codegen_flags: <defaults>
</compile_context>

<pallas_src>
import functools

import numpy as np
import jax
import jax.numpy as jnp
from jax.experimental import pallas as pl
from jax.experimental.pallas import tpu as pltpu


# ----------------------------------------------------------------------------
# Pallas kernel: PosPool ('xyz') projection + masked mean + 'sum' fusion
# ----------------------------------------------------------------------------
def _pospool_fuse_kernel(x_ref, geo_ref, w1_ref, b1_ref, w2_ref, b2_ref,
                         vfeat_ref, out_ref, *, ns, c_out, pack):
    w1 = w1_ref[...]                                # [ns*C_in, ns*H]   bf16
    w2 = w2_ref[...]                                # [ns*H, ns*C_out]  bf16

    # --- projection MLP (BN folded into the weights): lane-dense MXU matmuls --
    h = jnp.dot(x_ref[...], w1, preferred_element_type=jnp.float32) + b1_ref[...]
    h = jnp.maximum(h, 0.0)                         # [tm, ns*H]        f32
    y = jnp.dot(h.astype(w2.dtype), w2,
                preferred_element_type=jnp.float32) + b2_ref[...]
    y = jnp.maximum(y, 0.0)                         # [tm, ns*C_out]    f32

    # --- position-embedding weighting (normalizer, mask, 1/count pre-folded) --
    yw = y * geo_ref[...]                           # [tm, ns*C_out]    f32

    # --- masked mean over nsample: exact f32 halving tree over lane groups ----
    red = yw
    width = ns * c_out
    while width > c_out:
        half = width // 2
        red = red[:, :half] + red[:, half:width]
        width = half
    pooled = red                                    # [tm, C_out]

    # --- fusion 'sum' into the lane-dense (tm/pack, pack*C_out) output slab ---
    # slab row i, lane group j  <->  local voxel j*q + i (same as the wrapper).
    tm = yw.shape[0]
    q = tm // pack
    pooled_slab = jnp.concatenate(
        [pooled[j * q:(j + 1) * q, :] for j in range(pack)], axis=1)  # [q, 128]
    out_ref[...] = vfeat_ref[...] + pooled_slab     # one dense 128-lane store/row


def _block_diag(w, reps):
    """blockdiag(w, ..., w) with `reps` blocks: [reps*in, reps*out]."""
    return jnp.kron(jnp.eye(reps, dtype=w.dtype), w)


def pospool_fuse(rel_xyz, v_mask, x_grouped, w1, b1, w2, b2, v_feat, *,
                 v_size, tm=512):
    """PosPool('xyz') projection + masked mean + 'sum' fusion (eval-mode BN).

    rel_xyz   : [M, ns, 3]    grouped point xyz minus voxel center
    v_mask    : [M, ns]       1.0 where the sample slot holds a real point
    x_grouped : [M, ns, C_in] grouped point features
    w1, w2    : BN-folded Linear weights, [in, out];  b1, b2 : [out]
    v_feat    : [M, C_out]    voxel features to fuse with
    returns   : [M, C_out]    fused voxel features
    """
    M, ns, c_in = x_grouped.shape
    c_out = v_feat.shape[1]
    hidden = w1.shape[1]
    assert c_out % 4 == 0 and 128 % c_out == 0
    assert ns & (ns - 1) == 0, "power-of-two nsample assumed (halving tree)"
    pack = 128 // c_out                        # voxels packed per 128-lane row
    assert tm % (8 * pack) == 0 and tm % 16 == 0

    # ---- lane-dense per-voxel packing (layout plumbing only) -----------------
    # feature slab [M, ns*C_in], bf16 for the HBM/MXU stream
    x_slab = x_grouped.reshape(M, ns * c_in).astype(jnp.bfloat16)

    # position embedding slab [M, ns*C_out], f32, with normalizer + validity
    # mask + 1/count (masked mean) folded in -- the original module also
    # materializes this tiled tensor before the multiply.
    dist = jnp.sum(rel_xyz * rel_xyz, axis=-1, keepdims=True)        # [M,ns,1]
    normalizer = jnp.asarray(
        [v_size[0], v_size[1], v_size[2],
         v_size[0] ** 2 + v_size[1] ** 2 + v_size[2] ** 2], jnp.float32)
    geo4 = jnp.concatenate([rel_xyz, dist], axis=-1) / normalizer    # [M,ns,4]
    cnt = jnp.maximum(jnp.sum(v_mask, axis=1, keepdims=True), 1.0)   # [M,1]
    geo4 = geo4 * (v_mask / cnt)[..., None]
    geo_slab = jnp.tile(geo4, (1, 1, c_out // 4)).reshape(M, ns * c_out)
    geo_slab = geo_slab.astype(jnp.float32)

    # block-diagonal BN-folded weights: MXU shapes [ns*C_in, ns*H] / [ns*H, ns*C_out]
    w1bd = _block_diag(w1.astype(jnp.float32), ns).astype(jnp.bfloat16)
    w2bd = _block_diag(w2.astype(jnp.float32), ns).astype(jnp.bfloat16)
    b1t = jnp.tile(b1.reshape(1, hidden).astype(jnp.float32), (1, ns))
    b2t = jnp.tile(b2.reshape(1, c_out).astype(jnp.float32), (1, ns))

    # pad voxel count to a multiple of tm; padded rows have zero geo (mask) and
    # zero v_feat, so they produce zeros and are sliced off below.
    mp = ((M + tm - 1) // tm) * tm
    if mp != M:
        pad = mp - M
        x_slab = jnp.pad(x_slab, ((0, pad), (0, 0)))
        geo_slab = jnp.pad(geo_slab, ((0, pad), (0, 0)))
        v_feat = jnp.pad(v_feat, ((0, pad), (0, 0)))
    grid_n = mp // tm
    q = tm // pack

    # lane-dense packing of the voxel features / output slab:
    # v_slab[g*q + i, j*c_out + c] = v_feat[g*tm + j*q + i, c]
    v_slab = (v_feat.astype(jnp.float32)
              .reshape(grid_n, pack, q, c_out)
              .transpose(0, 2, 1, 3)
              .reshape(mp // pack, pack * c_out))

    kern = functools.partial(_pospool_fuse_kernel, ns=ns, c_out=c_out, pack=pack)
    rep = lambda shape: pl.BlockSpec(shape, lambda i: (0, 0))
    out_slab = pl.pallas_call(
        kern,
        out_shape=jax.ShapeDtypeStruct((mp // pack, pack * c_out), jnp.float32),
        grid=(grid_n,),
        in_specs=[pl.BlockSpec((tm, ns * c_in), lambda i: (i, 0)),
                  pl.BlockSpec((tm, ns * c_out), lambda i: (i, 0)),
                  rep((ns * c_in, ns * hidden)), rep((1, ns * hidden)),
                  rep((ns * hidden, ns * c_out)), rep((1, ns * c_out)),
                  pl.BlockSpec((q, pack * c_out), lambda i: (i, 0))],
        out_specs=pl.BlockSpec((q, pack * c_out), lambda i: (i, 0)),
        compiler_params=pltpu.CompilerParams(
            dimension_semantics=("parallel",)),
    )(x_slab, geo_slab, w1bd, b1t, w2bd, b2t, v_slab)

    # unpack the slab back to [M, C_out]
    out = (out_slab.reshape(grid_n, q, pack, c_out)
           .transpose(0, 2, 1, 3)
           .reshape(mp, c_out))
    return out[:M]


# ----------------------------------------------------------------------------
# Plain-JAX / host glue reproducing the module's data preparation
# ----------------------------------------------------------------------------
def get_v_coords(p_range, v_size, v_indices):
    """v_indices [M,4] = [bs, z_i, y_i, x_i]  ->  [M,4] = [bs, x, y, z]."""
    v_size_a = jnp.asarray(v_size, jnp.float32)[None, :]
    min_rng = jnp.asarray(p_range[0:3], jnp.float32)[None, :]
    v_xyz = (v_indices[:, [3, 2, 1]].astype(jnp.float32) + 0.5) * v_size_a + min_rng
    v_bs = v_indices[:, [0]].astype(jnp.float32)
    return jnp.concatenate([v_bs, v_xyz], axis=1)


def build_p_to_v_map(p_vox, p_bs, v_indices, n_pts_per_batch, num_samples):
    # TODO(synk): pv_utils.fill_dense_stack / point_voxel_query_stack are custom
    # CUDA hash-table kernels; their semantics (per-voxel gather of up to
    # num_samples in-voxel points, batch-local indices, -1 padding -> 0 + mask)
    # are reproduced with host-side numpy (data-dependent, not a Pallas fit).
    M = v_indices.shape[0]
    v_mask = np.zeros((M, num_samples), np.float32)
    global_idx = np.zeros((M, num_samples), np.int32)
    for m in range(M):
        b = int(v_indices[m, 0])
        zi, yi, xi = (int(v_indices[m, 1]), int(v_indices[m, 2]), int(v_indices[m, 3]))
        start = b * n_pts_per_batch
        end = start + n_pts_per_batch
        pv = p_vox[start:end]
        local = np.nonzero((pv[:, 0] == xi) & (pv[:, 1] == yi) & (pv[:, 2] == zi))[0]
        k = min(num_samples, local.shape[0])
        lm = np.zeros((num_samples,), np.int32)            # v_map[v_map < 0] = 0
        lm[:k] = local[:k]
        v_mask[m, :k] = 1.0
        global_idx[m] = lm + start                          # gather_stack per-batch offset
    return global_idx, v_mask


# ----------------------------------------------------------------------------
# Main: deterministic synthetic setup + run + reference check
# ----------------------------------------------------------------------------
if __name__ == "__main__":
    batch_size = 2
    num_samples = 8                      # nsample (power of two)
    c_in, hidden, c_out = 16, 32, 16     # proj_specs = [16, 32, 16]
    v_range = (4, 16, 16)                # (z_max, y_max, x_max)
    v_size = (0.1, 0.1, 0.1)             # (vx, vy, vz)
    pc_range = (0.0, 0.0, 0.0, 1.6, 1.6, 0.4)
    n_pts_per_batch = 256
    Np = batch_size * n_pts_per_batch
    vox_per_batch = 120
    M = batch_size * vox_per_batch       # 240 non-empty voxels
    tm = 64                              # -> 4 grid steps (>=2 per v7x core);
                                         #    sweep 256-1024 on real workloads
    eps = 1e-5

    key = jax.random.PRNGKey(0)
    (k_pts, k_feat, k_vf, k_w1, k_w2,
     k_g1, k_b1, k_m1, k_v1, k_g2, k_b2, k_m2, k_v2) = jax.random.split(key, 13)

    # points: [Np, 3] xyz in range + per-point batch index
    lo = jnp.asarray(pc_range[:3], jnp.float32)
    hi = jnp.asarray(pc_range[3:], jnp.float32)
    p_xyz = jax.random.uniform(k_pts, (Np, 3), jnp.float32) * (hi - lo) + lo
    p_bs = np.repeat(np.arange(batch_size), n_pts_per_batch)
    p_features = jax.random.normal(k_feat, (Np, c_in), jnp.float32) * 0.5

    # voxel indices: voxel cells of the first `vox_per_batch` points per batch
    p_xyz_np = np.asarray(p_xyz)
    p_vox = np.floor((p_xyz_np - np.asarray(pc_range[:3])) / np.asarray(v_size)).astype(np.int32)
    p_vox = np.clip(p_vox, 0, np.array([v_range[2] - 1, v_range[1] - 1, v_range[0] - 1]))
    sel = np.concatenate([np.arange(vox_per_batch),
                          n_pts_per_batch + np.arange(vox_per_batch)])
    v_indices_np = np.stack(
        [p_bs[sel], p_vox[sel, 2], p_vox[sel, 1], p_vox[sel, 0]], axis=1).astype(np.int32)
    v_indices = jnp.asarray(v_indices_np)                  # [M,4] = [bs, z, y, x]
    v_features = jax.random.normal(k_vf, (M, c_out), jnp.float32) * 0.5

    # voxel centers in metric coords
    v_coords = get_v_coords(pc_range, v_size, v_indices)
    centers = v_coords[:, 1:4]                             # [M, 3]

    # point -> voxel map + gather_stack (host/JAX glue)
    gidx, v_mask_np = build_p_to_v_map(p_vox, p_bs, v_indices_np,
                                       n_pts_per_batch, num_samples)
    gidx = jnp.asarray(gidx)                               # [M, ns] global point idx
    v_mask = jnp.asarray(v_mask_np)                        # [M, ns]
    grouped_coords = p_xyz[gidx]                           # [M, ns, 3]
    grouped_features = p_features[gidx]                    # [M, ns, C_in]
    rel_xyz = grouped_coords - centers[:, None, :]         # [M, ns, 3]

    # parameters (deterministic): Linear weights stored as [in, out]
    w1 = jax.random.normal(k_w1, (c_in, hidden), jnp.float32) / np.sqrt(c_in)
    w2 = jax.random.normal(k_w2, (hidden, c_out), jnp.float32) / np.sqrt(hidden)
    g1 = 1.0 + 0.1 * jax.random.normal(k_g1, (hidden,), jnp.float32)
    be1 = 0.1 * jax.random.normal(k_b1, (hidden,), jnp.float32)
    rm1 = 0.05 * jax.random.normal(k_m1, (hidden,), jnp.float32)
    rv1 = 0.9 + 0.2 * jax.random.uniform(k_v1, (hidden,), jnp.float32)
    g2 = 1.0 + 0.1 * jax.random.normal(k_g2, (c_out,), jnp.float32)
    be2 = 0.1 * jax.random.normal(k_b2, (c_out,), jnp.float32)
    rm2 = 0.05 * jax.random.normal(k_m2, (c_out,), jnp.float32)
    rv2 = 0.9 + 0.2 * jax.random.uniform(k_v2, (c_out,), jnp.float32)

    # eval-mode BatchNorm folded into per-channel scale/shift, then into the
    # Linear weights (exact algebra; standard inference transform).
    s1 = g1 / jnp.sqrt(rv1 + eps)
    b1v = be1 - rm1 * s1
    s2 = g2 / jnp.sqrt(rv2 + eps)
    b2v = be2 - rm2 * s2
    w1f = w1 * s1[None, :]
    w2f = w2 * s2[None, :]

    out = pospool_fuse(rel_xyz, v_mask, grouped_features,
                       w1f, b1v, w2f, b2v, v_features,
                       v_size=v_size, tm=tm)
    out = jax.block_until_ready(out)

    # ---- pure-JAX reference (same folded-BN + bf16 matmul operands) ----------
    normalizer = jnp.asarray(
        [v_size[0], v_size[1], v_size[2],
         v_size[0] ** 2 + v_size[1] ** 2 + v_size[2] ** 2], jnp.float32)
    dist = (rel_xyz ** 2).sum(2, keepdims=True)
    geo = jnp.concatenate([rel_xyz, dist], axis=2) / normalizer
    x_f = grouped_features.reshape(M * num_samples, c_in)
    xh = jnp.maximum(
        jnp.dot(x_f.astype(jnp.bfloat16), w1f.astype(jnp.bfloat16),
                preferred_element_type=jnp.float32) + b1v[None, :], 0.0)
    yr = jnp.maximum(
        jnp.dot(xh.astype(jnp.bfloat16), w2f.astype(jnp.bfloat16),
                preferred_element_type=jnp.float32) + b2v[None, :], 0.0)
    yr = yr.reshape(M, num_samples, c_out) * jnp.tile(geo, (1, 1, c_out // 4))
    pooled = (yr * v_mask[..., None]).sum(1) / jnp.maximum(
        v_mask.sum(1, keepdims=True), 1.0)
    ref = v_features + pooled

    # bf16 feature stream (per review): kernel and reference use matching bf16
    # matmul operands with f32 accumulation; tolerance absorbs bf16 re-rounding
    # of the hidden activations (review correctness note).
    np.testing.assert_allclose(np.asarray(out), np.asarray(ref),
                               rtol=5e-3, atol=5e-3)
    # output sparse tensor equivalent: (fused features, v_indices) — indices unchanged
    print("KERNEL_OK")
</pallas_src>

<mosaic_0001>
module attributes {stable_mosaic.version = 11 : i64} {
  func.func @_pospool_fuse_kernel(%arg0: i32, %arg1: memref<64x128xbf16, #tpu.memory_space<vmem>>, %arg2: memref<64x128xf32, #tpu.memory_space<vmem>>, %arg3: memref<128x256xbf16, #tpu.memory_space<vmem>>, %arg4: memref<1x256xf32, #tpu.memory_space<vmem>>, %arg5: memref<256x128xbf16, #tpu.memory_space<vmem>>, %arg6: memref<1x128xf32, #tpu.memory_space<vmem>>, %arg7: memref<8x128xf32, #tpu.memory_space<vmem>>, %arg8: memref<8x128xf32, #tpu.memory_space<vmem>>) attributes {dimension_semantics = [#tpu.dimension_semantics<parallel>], iteration_bounds = array<i64: 4>, scalar_prefetch = 0 : i64, scratch_operands = 0 : i64, tpu.core_type = #tpu.core_type<tc>, window_params = [{transform_indices = @transform_0, window_bounds = array<i64: 64, 128>}, {transform_indices = @transform_1, window_bounds = array<i64: 64, 128>}, {pipeline_mode = #tpu.pipeline_mode<synchronous>, transform_indices = @transform_2, window_bounds = array<i64: 128, 256>}, {pipeline_mode = #tpu.pipeline_mode<synchronous>, transform_indices = @transform_3, window_bounds = array<i64: 1, 256>}, {pipeline_mode = #tpu.pipeline_mode<synchronous>, transform_indices = @transform_4, window_bounds = array<i64: 256, 128>}, {pipeline_mode = #tpu.pipeline_mode<synchronous>, transform_indices = @transform_5, window_bounds = array<i64: 1, 128>}, {transform_indices = @transform_6, window_bounds = array<i64: 8, 128>}, {transform_indices = @transform_7, window_bounds = array<i64: 8, 128>}]} {
    %c0 = arith.constant 0 : index
    %c0_0 = arith.constant 0 : index
    %0 = vector.load %arg3[%c0, %c0_0] : memref<128x256xbf16, #tpu.memory_space<vmem>>, vector<128x256xbf16>
    %c0_1 = arith.constant 0 : index
    %c0_2 = arith.constant 0 : index
    %1 = vector.load %arg5[%c0_1, %c0_2] : memref<256x128xbf16, #tpu.memory_space<vmem>>, vector<256x128xbf16>
    %c0_3 = arith.constant 0 : index
    %c0_4 = arith.constant 0 : index
    %2 = vector.load %arg1[%c0_3, %c0_4] : memref<64x128xbf16, #tpu.memory_space<vmem>>, vector<64x128xbf16>
    %cst = arith.constant dense<0.000000e+00> : vector<64x256xf32>
    %3 = tpu.matmul %2, %0, %cst {dimension_numbers = #tpu.dot_dimension_numbers<[1], [0], [0], [1], [0, 0, 1, 1], [], []>} : vector<64x128xbf16>, vector<128x256xbf16>, vector<64x256xf32> -> vector<64x256xf32>
    %c0_5 = arith.constant 0 : index
    %c0_6 = arith.constant 0 : index
    %4 = vector.load %arg4[%c0_5, %c0_6] : memref<1x256xf32, #tpu.memory_space<vmem>>, vector<1x256xf32>
    %5 = vector.broadcast %4 : vector<1x256xf32> to vector<64x256xf32>
    %6 = arith.addf %3, %5 : vector<64x256xf32>
    %cst_7 = arith.constant 0.000000e+00 : f32
    %7 = vector.broadcast %cst_7 : f32 to vector<64x256xf32>
    %8 = arith.maximumf %6, %7 : vector<64x256xf32>
    %9 = arith.truncf %8 : vector<64x256xf32> to vector<64x256xbf16>
    %cst_8 = arith.constant dense<0.000000e+00> : vector<64x128xf32>
    %10 = tpu.matmul %9, %1, %cst_8 {dimension_numbers = #tpu.dot_dimension_numbers<[1], [0], [0], [1], [0, 0, 1, 1], [], []>} : vector<64x256xbf16>, vector<256x128xbf16>, vector<64x128xf32> -> vector<64x128xf32>
    %c0_9 = arith.constant 0 : index
    %c0_10 = arith.constant 0 : index
    %11 = vector.load %arg6[%c0_9, %c0_10] : memref<1x128xf32, #tpu.memory_space<vmem>>, vector<1x128xf32>
    %12 = vector.broadcast %11 : vector<1x128xf32> to vector<64x128xf32>
    %13 = arith.addf %10, %12 : vector<64x128xf32>
    %cst_11 = arith.constant 0.000000e+00 : f32
    %14 = vector.broadcast %cst_11 : f32 to vector<64x128xf32>
    %15 = arith.maximumf %13, %14 : vector<64x128xf32>
    %c0_12 = arith.constant 0 : index
    %c0_13 = arith.constant 0 : index
    %16 = vector.load %arg2[%c0_12, %c0_13] : memref<64x128xf32, #tpu.memory_space<vmem>>, vector<64x128xf32>
    %17 = arith.mulf %15, %16 : vector<64x128xf32>
    %18 = vector.extract_strided_slice %17 {offsets = [0, 0], sizes = [64, 64], strides = [1, 1]} : vector<64x128xf32> to vector<64x64xf32>
    %19 = vector.extract_strided_slice %17 {offsets = [0, 64], sizes = [64, 64], strides = [1, 1]} : vector<64x128xf32> to vector<64x64xf32>
    %20 = arith.addf %18, %19 : vector<64x64xf32>
    %21 = vector.extract_strided_slice %20 {offsets = [0, 0], sizes = [64, 32], strides = [1, 1]} : vector<64x64xf32> to vector<64x32xf32>
    %22 = vector.extract_strided_slice %20 {offsets = [0, 32], sizes = [64, 32], strides = [1, 1]} : vector<64x64xf32> to vector<64x32xf32>
    %23 = arith.addf %21, %22 : vector<64x32xf32>
    %24 = vector.extract_strided_slice %23 {offsets = [0, 0], sizes = [64, 16], strides = [1, 1]} : vector<64x32xf32> to vector<64x16xf32>
    %25 = vector.extract_strided_slice %23 {offsets = [0, 16], sizes = [64, 16], strides = [1, 1]} : vector<64x32xf32> to vector<64x16xf32>
    %26 = arith.addf %24, %25 : vector<64x16xf32>
    %27 = vector.extract_strided_slice %26 {offsets = [0, 0], sizes = [8, 16], strides = [1, 1]} : vector<64x16xf32> to vector<8x16xf32>
    %28 = vector.extract_strided_slice %26 {offsets = [8, 0], sizes = [8, 16], strides = [1, 1]} : vector<64x16xf32> to vector<8x16xf32>
    %29 = vector.extract_strided_slice %26 {offsets = [16, 0], sizes = [8, 16], strides = [1, 1]} : vector<64x16xf32> to vector<8x16xf32>
    %30 = vector.extract_strided_slice %26 {offsets = [24, 0], sizes = [8, 16], strides = [1, 1]} : vector<64x16xf32> to vector<8x16xf32>
    %31 = vector.extract_strided_slice %26 {offsets = [32, 0], sizes = [8, 16], strides = [1, 1]} : vector<64x16xf32> to vector<8x16xf32>
    %32 = vector.extract_strided_slice %26 {offsets = [40, 0], sizes = [8, 16], strides = [1, 1]} : vector<64x16xf32> to vector<8x16xf32>
    %33 = vector.extract_strided_slice %26 {offsets = [48, 0], sizes = [8, 16], strides = [1, 1]} : vector<64x16xf32> to vector<8x16xf32>
    %34 = vector.extract_strided_slice %26 {offsets = [56, 0], sizes = [8, 16], strides = [1, 1]} : vector<64x16xf32> to vector<8x16xf32>
    %35 = tpu.concatenate %27, %28, %29, %30, %31, %32, %33, %34 in 1 : vector<8x16xf32>, vector<8x16xf32>, vector<8x16xf32>, vector<8x16xf32>, vector<8x16xf32>, vector<8x16xf32>, vector<8x16xf32>, vector<8x16xf32> -> vector<8x128xf32>
    %c0_14 = arith.constant 0 : index
    %c0_15 = arith.constant 0 : index
    %36 = vector.load %arg7[%c0_14, %c0_15] : memref<8x128xf32, #tpu.memory_space<vmem>>, vector<8x128xf32>
    %37 = arith.addf %36, %35 : vector<8x128xf32>
    %c0_16 = arith.constant 0 : index
    %c0_17 = arith.constant 0 : index
    %38 = vector.load %arg8[%c0_16, %c0_17] : memref<8x128xf32, #tpu.memory_space<vmem>>, vector<8x128xf32>
    tpu.vector_store %arg8[%c0_16, %c0_17], %37 {strides = array<i32>} : memref<8x128xf32, #tpu.memory_space<vmem>>, vector<8x128xf32>,
    return
  }
  func.func @transform_0(%arg0: i32) -> (i32, i32) {
    %c0_i32 = arith.constant 0 : i32
    %c0_i32_0 = arith.constant 0 : i32
    return %arg0, %c0_i32 : i32, i32
  }
  func.func @transform_1(%arg0: i32) -> (i32, i32) {
    %c0_i32 = arith.constant 0 : i32
    %c0_i32_0 = arith.constant 0 : i32
    return %arg0, %c0_i32 : i32, i32
  }
  func.func @transform_2(%arg0: i32) -> (i32, i32) {
    %c0_i32 = arith.constant 0 : i32
    %c0_i32_0 = arith.constant 0 : i32
    %c0_i32_1 = arith.constant 0 : i32
    return %c0_i32, %c0_i32_0 : i32, i32
  }
  func.func @transform_3(%arg0: i32) -> (i32, i32) {
    %c0_i32 = arith.constant 0 : i32
    %c0_i32_0 = arith.constant 0 : i32
    %c0_i32_1 = arith.constant 0 : i32
    return %c0_i32, %c0_i32_0 : i32, i32
  }
  func.func @transform_4(%arg0: i32) -> (i32, i32) {
    %c0_i32 = arith.constant 0 : i32
    %c0_i32_0 = arith.constant 0 : i32
    %c0_i32_1 = arith.constant 0 : i32
    return %c0_i32, %c0_i32_0 : i32, i32
  }
  func.func @transform_5(%arg0: i32) -> (i32, i32) {
    %c0_i32 = arith.constant 0 : i32
    %c0_i32_0 = arith.constant 0 : i32
    %c0_i32_1 = arith.constant 0 : i32
    return %c0_i32, %c0_i32_0 : i32, i32
  }
  func.func @transform_6(%arg0: i32) -> (i32, i32) {
    %c0_i32 = arith.constant 0 : i32
    %c0_i32_0 = arith.constant 0 : i32
    return %arg0, %c0_i32 : i32, i32
  }
  func.func @transform_7(%arg0: i32) -> (i32, i32) {
    %c0_i32 = arith.constant 0 : i32
    %c0_i32_0 = arith.constant 0 : i32
    return %arg0, %c0_i32 : i32, i32
  }
}

</mosaic_0001>

<bundles_post_ra>
// kernel: tpu_custom_call.1
= control target key start
LH: loop header
LB: loop body
LE: loop exit
PB: predicated region body
PF: predicated region fallthrough
CT: control target
= control target key end

     0   :  { %s2074_s0 = inlined_call_operand.hbm [shape: bf16[256,128], index: 0, kind: input, shape index: {}]   ;;  %s2075_s1 = inlined_call_operand.hbm [shape: f32[256,128], index: 1, kind: input, shape index: {}]   ;;  %s2076_s2 = inlined_call_operand.hbm [shape: bf16[128,256], index: 2, kind: input, shape index: {}]   ;;  %s2077_s3 = inlined_call_operand.vmem [shape: f32[1,256], index: 3, kind: input, shape index: {}]   ;;  %s2078_s4 = inlined_call_operand.hbm [shape: bf16[256,128], index: 4, kind: input, shape index: {}]   ;;  %s2079_s5 = inlined_call_operand.vmem [shape: f32[1,128], index: 5, kind: input, shape index: {}]   ;;  %s2080_s6 = inlined_call_operand.hbm [shape: f32[32,128], index: 6, kind: input, shape index: {}]   ;;  %s2081_s7 = inlined_call_operand.hbm [shape: f32[32,128], index: 7, kind: output, shape index: {}]  }
   0x1   :  { %2100 = sst [smem:[#allocation22_spill]] %s2074_s0 }
   0x2   :  { %2101 = sst [smem:[#allocation23_spill]] %s2076_s2 }
   0x3   :  { %12 = vsyncpa [#allocation3], 0 }
   0x4   :  { %14 = vsyncpa [#allocation3 + $0x1], 0 }
   0x5   :  { %15 = vsyncpa [#allocation6], 0 }
   0x6   :  { %17 = vsyncpa [#allocation6 + $0x1], 0 }
   0x7   :  { %18 = vsyncpa [#allocation9], 0 }
   0x8   :  { %19 = vsyncpa [#allocation4], 0 }
   0x9   :  { %21 = vsyncpa [#allocation4 + $0x1], 0  ;;  %s1699_s24 = smov 0   ;;  %s1701_s25 = smov 0  }
   0xa   :  { %s1703_s26 = smov 0   ;;  %s1705_s27 = smov 0  }
   0xb LB: > { %2102 = sst [smem:[#allocation18_spill]] %s1627_s24  ;;  %s1720_s28 = sadd.s32 4294967295, %s1639_s27   ;;  %s1639_s27 = sphi %s1705_s27, %s2137_s27   ;;  %s1635_s26 = sphi %s1703_s26, %s2141_s26   ;;  %s1631_s25 = sphi %s1701_s25, %s2140_s25   ;;  %s1627_s24 = sphi %s1699_s24, %s2139_s24  }
   0xc   : > { %s1175_s29 = sadd.s32 4294967294, %s1639_s27   ;;  %s1724_s30 = sadd.s32 1, %s1639_s27  }
   0xd   : > { %2103 = sst [smem:[#allocation19_spill]] %s1724_s30  ;;  %s34_s8 = sadd.s32 1, %s1635_s26 }
   0xe   : > { %s31_s9 = ssub.s32 %s1639_s27, %s1724_s30  ;;  %p41_p0 = scmp.ne.s32.totalorder %s1635_s26, %s1631_s25 }
   0xf   : > { %p32_p1 = scmp.eq.s32.totalorder %s31_s9, 0  ;;  %p42_p2 = scmp.eq.s32.totalorder %s1639_s27, 0 }
  0x10   : > { %p47_p3 = scmp.ne.s32.totalorder %s1631_s25, %s1627_s24  ;;  %p2082_p4 = scmp.eq.s32.totalorder %s1720_s28, 0 }
  0x11   : > { %s1736_s10 = scalar_select %p32_p1, %s1635_s26, %s34_s8  }
  0x12   : > { %p1738_p5 = por %p42_p2, %p41_p0  ;;  %p1744_p6 = por %p2082_p4, %p47_p3 }
  0x13   : > { %2104 = sst [smem:[#allocation20_spill]] %s1736_s10  ;;  %p207_p7 = scmp.eq.s32.totalorder %s1720_s28, 3 }
  0x14   : > { %s2105_s11 = scalar_select %p1738_p5, 1, 0 }
  0x15   : > { %s2106_s12 = scalar_select %p1744_p6, 1, 0 }
  0x16   : > { %p213_p8 = scmp.eq.s32.totalorder %s1175_s29, 3  ;;  %p1176_p9 = scmp.ge.s32.totalorder %s1639_s27, 1 }
  0x17   : > { %p220_p10 = scmp.lt.s32.totalorder %s1639_s27, 5  ;;  %p1751_p11 = por %p207_p7, %p41_p0 }
  0x18   : > { %p1755_p12 = por %p213_p8, %p47_p3  ;;  %s1641_s16 = smov [#allocation7]  }
  0x19   : > { %s2107_s13 = scalar_select %p1751_p11, 1, 0 }
  0x1a   : > { %s2108_s14 = scalar_select %p1755_p12, 1, 0 }
  0x1b   : > { %p1759_p13 = pnand %p1176_p9, %p220_p10  ;;  %s232_s17 = sshll.u32 %s1641_s16, 4  ;;  %s233_s17 = int_to_ptr.vmem [resolvable:$true] %s232_s17 }
  0x1c   : > { %2109 = sst [smem:[#allocation21_spill]] %s2108_s14  ;;  %s2112_s2 = sld [smem:[#allocation23_spill]] }
  0x1d   : > { %s2110_s15 = scalar_select %p1759_p13, 1, 0 }
  0x1e   : > { %p1294_p1 = pneg %p1759_p13 }
  0x20   : > { %p1767_p2 = pnand %p1294_p1, %p2082_p4 }
  0x22   : > { %s2111_s18 = scalar_select %p1767_p2, 1, 0 }
  0x23   : > { %s1411_s21 = scalar_lea.hbm %s2112_s2, 2048  ;;  %p2092_p7 = pneg %p1767_p2 }
  0x24   : > { %p1412_p3 = scmp.ne.s32.totalorder %s2112_s2, %s1411_s21  ;;  %p1418_p10 = scmp.lt.u32.totalorder %s1411_s21, %s2112_s2 }
  0x26   : > { %p1414_p8 = pnand %p2092_p7, %p1412_p3 }
  0x28   : > { %p1415_p9 = pneg %p1414_p8 }
  0x2a   : > { %p1420_p1 = pnand %p1418_p10, %p1415_p9 }
  0x2c   : > { %1423 = shalt.err (!%p1420_p1)
}
  0x2d   : > { %s1424_s9 = scalar_lea.vmem %s233_s17, 2048  ;;  %p1432_p11 = scmp.lt.s32.totalorder %s233_s17, %s233_s17 }
  0x2e   : > { %p1425_p4 = scmp.ne.s32.totalorder %s233_s17, %s1424_s9  ;;  %p1433_p6 = scmp.lt.s32.totalorder %s1424_s9, %s1424_s9 }
  0x30   : > { %p1427_p0 = pnand %p1425_p4, %p2092_p7  ;;  %p1434_p13 = por %p1433_p6, %p1432_p11 }
  0x32   : > { %p1428_p12 = pneg %p1427_p0 }
  0x34   : > { %p1435_p5 = pnand %p1434_p13, %p1428_p12 }
  0x36   : > { %1438 = shalt.err (!%p1435_p5)
}
  0x37   : > { %s2090_s16 = smov 128   ;;  %s2091_s19 = smov 8  }
  0x38   : > { %1297 = dma.hbm_to_vmem [thread:$0]  (!%p1767_p2), %s2112_s2, 2048, %s233_s17, [#allocation6], %s2090_s16, %s2090_s16, %s2091_s19  }
  0x39   : > { %s2095_s22 = sand.u32 1, %s1639_s27   ;;  %s1799_s23 = sand.u32 1, %s1635_s26  }
  0x3a   : > { %s1180_s29 = sshll.u32 %s1799_s23, 5  ;;  %s1236_s8 = sshll.u32 %s1639_s27, 9 }
  0x3b   : > { %s2113_s0 = sld [smem:[#allocation22_spill]]  ;;  %s269_s14 = scalar_lea.vmem [#allocation2], %s1180_s29 }
  0x3c   : > { %s276_s24 = sshll.u32 %s269_s14, 4  ;;  %p2114_p4 = scmp.ne.s32.totalorder %s2105_s11, 0  ;;  %s1808_s24 = int_to_ptr.vmem [resolvable:$true] %s276_s24 }
  0x3d   : > { %p2115_p5 = scmp.lt.s32.totalorder %s1639_s27, 4  ;;  %s1644_s20 = smov [#allocation8]  }
  0x3e   : > { %s1818_s21 = sshll.u32 %s1644_s20, 4  ;;  %s1822_s10 = scalar_lea.sflag [#allocation3], %s2095_s22  ;;  %s249_s21 = int_to_ptr.vmem [resolvable:$true] %s1818_s21 }
  0x3f   : > { %p1814_p6 = pnand %p2115_p5, %p2114_p4 }
  0x41   : > { %s1806_s30 = scalar_lea.hbm %s2113_s0, %s1236_s8  ;;  %p1828_p12 = pneg %p1814_p6 }
  0x42   : > { %s2116_s17 = scalar_select %p1814_p6, 1, 0 }
  0x43   : > { %s1439_s8 = scalar_lea.hbm %s1806_s30, 512  ;;  %s1444_s9 = scalar_lea.hbm %s2113_s0, 2048 }
  0x44   : > { %p1440_p11 = scmp.ne.s32.totalorder %s1806_s30, %s1439_s8  ;;  %p1445_p3 = scmp.lt.u32.totalorder %s1806_s30, %s2113_s0 }
  0x45   : > { %s2117_s14 = scalar_select %p1828_p12, 1, 0 }
  0x46   : > { %p1442_p13 = pnand %p1828_p12, %p1440_p11  ;;  %p1446_p8 = scmp.lt.u32.totalorder %s1444_s9, %s1439_s8 }
  0x47   : > { %p1448_p10 = scmp.lt.u32.totalorder %s1439_s8, %s1806_s30 }
  0x48   : > { %p1443_p0 = pneg %p1442_p13  ;;  %p1447_p9 = por %p1446_p8, %p1445_p3 }
  0x4a   : > { %p1449_p1 = por %p1448_p10, %p1447_p9 }
  0x4c   : > { %p1450_p4 = pnand %p1449_p1, %p1443_p0 }
  0x4e   : > { %1453 = shalt.err (!%p1450_p4)
}
  0x4f   : > { %s1454_s19 = scalar_lea.vmem %s1808_s24, 512  ;;  %s1645_s11 = smov [#allocation2]  }
  0x50   : > { %p1455_p5 = scmp.ne.s32.totalorder %s1808_s24, %s1454_s19  ;;  %s1459_s29 = sshll.u32 %s1645_s11, 4  ;;  %s1460_s29 = int_to_ptr.vmem [resolvable:$false] %s1459_s29 }
  0x51   : > { %s1461_s16 = scalar_lea.vmem %s1460_s29, 1024  ;;  %p1462_p7 = scmp.lt.s32.totalorder %s1808_s24, %s1460_s29 }
  0x52   : > { %p1457_p11 = pnand %p1455_p5, %p1828_p12  ;;  %p1463_p2 = scmp.lt.s32.totalorder %s1461_s16, %s1454_s19 }
  0x54   : > { %p1458_p13 = pneg %p1457_p11  ;;  %p1464_p3 = por %p1463_p2, %p1462_p7 }
  0x56   : > { %p1465_p8 = pnand %p1464_p3, %p1458_p13 }
  0x58   : > { %1468 = shalt.err (!%p1465_p8)
}
  0x59   : > { %s1646_s8 = smov 64   ;;  %s1647_s9 = smov 4  }
  0x5a   : > { %1304 = dma.hbm_to_vmem [thread:$0]  (!%p1814_p6), %s1806_s30, 512, %s1808_s24, %s1822_s10, %s1646_s8, %s1646_s8, %s1647_s9  }
  0x5b   : > { %s1183_s20 = sshll.u32 %s1799_s23, 6  ;;  %s1469_s19 = scalar_lea.hbm %s2078_s4, 2048 }
  0x5c   : > { %p1470_p2 = scmp.ne.s32.totalorder %s2078_s4, %s1469_s19  ;;  %p2118_p7 = scmp.ne.s32.totalorder %s2111_s18, 0 }
  0x5d   : > { %p1476_p1 = scmp.lt.u32.totalorder %s1469_s19, %s2078_s4 }
  0x5e   : > { %p2119_p0 = pneg %p2118_p7 }
  0x60   : > { %p1472_p9 = pnand %p1470_p2, %p2119_p0 }
  0x62   : > { %p1473_p10 = pneg %p1472_p9 }
  0x64   : > { %p1478_p4 = pnand %p1476_p1, %p1473_p10 }
  0x66   : > { %1481 = shalt.err (!%p1478_p4)
}
  0x67   : > { %s1482_s24 = scalar_lea.vmem %s249_s21, 2048  ;;  %p2120_p11 = pmov %p2119_p0 }
  0x68   : > { %p1483_p5 = scmp.ne.s32.totalorder %s249_s21, %s1482_s24  ;;  %p1490_p8 = scmp.lt.s32.totalorder %s249_s21, %s249_s21 }
  0x69   : > { %p1491_p6 = scmp.lt.s32.totalorder %s1482_s24, %s1482_s24 }
  0x6a   : > { %p1485_p13 = pnand %p1483_p5, %p2120_p11 }
  0x6b   : > { %p1492_p12 = por %p1491_p6, %p1490_p8 }
  0x6c   : > { %p1486_p3 = pneg %p1485_p13 }
  0x6e   : > { %p1493_p0 = pnand %p1492_p12, %p1486_p3 }
  0x70   : > { %1496 = shalt.err (!%p1493_p0)
}
  0x71   : > { %1300 = dma.hbm_to_vmem [thread:$0]  (!%p2118_p7), %s2078_s4, 2048, %s249_s21, [#allocation9], %s1646_s8, %s1646_s8, %s1647_s9  }
  0x72   : > { %s1237_s0 = sshll.u32 %s1639_s27, 10  ;;  %s290_s29 = scalar_lea.vmem [#allocation5], %s1183_s20 }
  0x73   : > { %s1878_s19 = scalar_lea.hbm %s2075_s1, %s1237_s0  ;;  %s297_s18 = sshll.u32 %s290_s29, 4  ;;  %s1880_s18 = int_to_ptr.vmem [resolvable:$true] %s297_s18 }
  0x74   : > { %s1186_s16 = sshll.u32 %s1799_s23, 3  ;;  %s2121_s24 = sand.u32 1, %s1639_s27  }
  0x75   : > { %s1885_s30 = scalar_lea.sflag [#allocation6], %s2121_s24  ;;  %s1497_s22 = scalar_lea.hbm %s1878_s19, 1024 }
  0x76   : > { %p1498_p6 = scmp.ne.s32.totalorder %s1878_s19, %s1497_s22  ;;  %p2122_p12 = scmp.ne.s32.totalorder %s2117_s14, 0 }
  0x77   : > { %s1502_s9 = scalar_lea.hbm %s2075_s1, 4096  ;;  %p1503_p9 = scmp.lt.u32.totalorder %s1878_s19, %s2075_s1 }
  0x78   : > { %p1500_p2 = pnand %p1498_p6, %p2122_p12  ;;  %p1504_p10 = scmp.lt.u32.totalorder %s1502_s9, %s1497_s22 }
  0x79   : > { %p1506_p4 = scmp.lt.u32.totalorder %s1497_s22, %s1878_s19 }
  0x7a   : > { %p1501_p7 = pneg %p1500_p2  ;;  %p1505_p1 = por %p1504_p10, %p1503_p9 }
  0x7c   : > { %p1507_p5 = por %p1506_p4, %p1505_p1 }
  0x7e   : > { %p1508_p11 = pnand %p1507_p5, %p1501_p7 }
  0x80   : > { %1511 = shalt.err (!%p1508_p11)
}
  0x81   : > { %s1512_s20 = scalar_lea.vmem %s1880_s18, 1024  ;;  %s1648_s11 = smov [#allocation5]  }
  0x82   : > { %p1513_p13 = scmp.ne.s32.totalorder %s1880_s18, %s1512_s20  ;;  %s1517_s29 = sshll.u32 %s1648_s11, 4  ;;  %s1518_s29 = int_to_ptr.vmem [resolvable:$false] %s1517_s29 }
  0x83   : > { %s1519_s24 = scalar_lea.vmem %s1518_s29, 2048  ;;  %p1520_p0 = scmp.lt.s32.totalorder %s1880_s18, %s1518_s29 }
  0x84   : > { %p1515_p3 = pnand %p1513_p13, %p2122_p12  ;;  %p1521_p6 = scmp.lt.s32.totalorder %s1519_s24, %s1512_s20 }
  0x86   : > { %p1516_p8 = pneg %p1515_p3  ;;  %p1522_p2 = por %p1521_p6, %p1520_p0 }
  0x88   : > { %p1523_p9 = pnand %p1522_p2, %p1516_p8 }
  0x8a   : > { %1526 = shalt.err (!%p1523_p9)
}
  0x8b   : > { %p2123_p7 = scmp.ne.s32.totalorder %s2116_s17, 0  ;;  %s2124_s22 = smov 8  }
  0x8c   : > { %s2125_s21 = smov 128   ;;  %s1187_s8 = sshll.u32 %s1639_s27, 7 }
  0x8d   : > { %1307 = dma.hbm_to_vmem [thread:$0]  (!%p2123_p7), %s1878_s19, 1024, %s1880_s18, %s1885_s30, %s2125_s21, %s2125_s21, %s2124_s22  }
  0x8e   : > { %s1916_s2 = scalar_lea.hbm %s2080_s6, %s1187_s8  ;;  %s311_s20 = scalar_lea.vmem [#allocation10], %s1186_s16 }
  0x8f   : > { %s318_s11 = sshll.u32 %s311_s20, 4  ;;  %s1527_s29 = scalar_lea.hbm %s1916_s2, 128  ;;  %s319_s11 = int_to_ptr.vmem [resolvable:$true] %s318_s11 }
  0x90   : > { %p1528_p10 = scmp.ne.s32.totalorder %s1916_s2, %s1527_s29  ;;  %s1532_s30 = scalar_lea.hbm %s2080_s6, 512 }
  0x91   : > { %p1533_p5 = scmp.lt.u32.totalorder %s1916_s2, %s2080_s6  ;;  %p1534_p11 = scmp.lt.u32.totalorder %s1532_s30, %s1527_s29 }
  0x92   : > { %p1530_p1 = pnand %p1528_p10, %p2122_p12  ;;  %p1536_p3 = scmp.lt.u32.totalorder %s1527_s29, %s1916_s2 }
  0x93   : > { %p1535_p13 = por %p1534_p11, %p1533_p5 }
  0x94   : > { %p1531_p4 = pneg %p1530_p1 }
  0x95   : > { %p1537_p8 = por %p1536_p3, %p1535_p13 }
  0x97   : > { %p1538_p0 = pnand %p1537_p8, %p1531_p4 }
  0x99   : > { %1541 = shalt.err (!%p1538_p0)
}
  0x9a   : > { %s1542_s23 = scalar_lea.vmem %s319_s11, 128  ;;  %s1649_s16 = smov [#allocation10]  }
  0x9b   : > { %p1543_p6 = scmp.ne.s32.totalorder %s319_s11, %s1542_s23  ;;  %s1547_s21 = sshll.u32 %s1649_s16, 4  ;;  %s1548_s21 = int_to_ptr.vmem [resolvable:$false] %s1547_s21 }
  0x9c   : > { %s1549_s8 = scalar_lea.vmem %s1548_s21, 256  ;;  %p1550_p10 = scmp.lt.s32.totalorder %s319_s11, %s1548_s21 }
  0x9d   : > { %p1545_p2 = pnand %p1543_p6, %p2122_p12  ;;  %p1551_p1 = scmp.lt.s32.totalorder %s1549_s8, %s1542_s23 }
  0x9f   : > { %p1546_p9 = pneg %p1545_p2  ;;  %p1552_p7 = por %p1551_p1, %p1550_p10 }
  0xa1   : > { %p1553_p5 = pnand %p1552_p7, %p1546_p9 }
  0xa3   : > { %1556 = shalt.err (!%p1553_p5)
}
  0xa4   : > { %p2126_p11 = scmp.ne.s32.totalorder %s2116_s17, 0  ;;  %p2127_p4 = scmp.ne.s32.totalorder %s2110_s15, 0 }
  0xa5   : > { %s329_s14 = sand.u32 (!%p2127_p4), 1, %s1720_s28   ;;  %s1942_s9 = sand.u32 (!%p2127_p4), 1, %s1631_s25  }
  0xa6   : > { %1310 = dma.hbm_to_vmem [thread:$0]  (!%p2126_p11), %s1916_s2, 128, %s319_s11, %s1822_s10  }
  0xa7   : > { %327 = sbr.rel (%p2127_p4) target bundleno = 1172 (0x494), region = 48  ;;  %s1189_s0 = sshll.u32 (!%p2127_p4), %s1942_s9, 5 }
  0xa8   : > { %s330_s20 = scalar_lea.sflag (!%p2127_p4), [#allocation3], %s329_s14  ;;  %s1945_s29 = scalar_lea.vmem (!%p2127_p4), [#allocation2], %s1189_s0 }
  0xa9   : > { %p2128_p12 = scmp.ne.s32.totalorder (!%p2127_p4), %s2106_s12, 0 }
  0xae   : > { %1602 = dma.done.wait (%p2128_p12), %s330_s20, 512  }
  0xaf   : > { %1604 = vsyncadd (%p2128_p12), %s330_s20, 4294966784  ;;  %s1190_s15 = sshll.u32 %s1942_s9, 6  ;;  %s339_s17 = scalar_lea.sflag [#allocation6], %s329_s14 }
  0xb0   : > { %s1952_s10 = scalar_lea.vmem [#allocation5], %s1190_s15 }
  0xb1   : > { %1606 = dma.done.wait (%p2128_p12), %s339_s17, 1024  }
  0xb2   : > { %1608 = vsyncadd (%p2128_p12), %s339_s17, 4294966272  ;;  %p2129_p7 = scmp.eq.s32.totalorder %s1720_s28, 0 }
  0xb4   : > { %1610 = dma.done.wait (%p2129_p7), [#allocation6], 2048   ;;  %p2130_p13 = pmov %p2129_p7 }
  0xb5   : > { %p2131_p3 = pmov %p2129_p7 }
  0xb6   : > { %1612 = vsyncadd (%p2130_p13), [#allocation6], 4294965248 }
  0xb7   : > { %1614 = dma.done.wait (%p2131_p3), [#allocation9], 2048   ;;  %p2132_p8 = pmov %p2131_p3 }
  0xb8   : > { %s1193_s2 = sshll.u32 %s1942_s9, 3 }
  0xb9   : > { %1616 = vsyncadd (%p2132_p8), [#allocation9], 4294965248  ;;  %s1969_s11 = scalar_lea.vmem [#allocation10], %s1193_s2 }
  0xba   : > { %1618 = dma.done.wait (%p2128_p12), %s330_s20, 128  }
  0xbb   : > { %1620 = vsyncadd (%p2128_p12), %s330_s20, 4294967168  ;;  %v1650_v0 = vmov 0   ;;  %v1367_v1 = vld [vmem:[#allocation7 + $0x4] ss:$8 sps:$4 sm:$0xff]   ;;  %v1369_v2 = vld [vmem:[#allocation7] ss:$8 sps:$4 sm:$0xff]   ;;  %v461_v37 = vlaneseq }
  0xbc   : > { %607 = vmatprep.mubr.bf16.mxu0 %v1650_v0  ;;  %575 = vmatprep.subr.bf16.mxu0 %v1367_v1  ;;  %v1370_v3 = vld [vmem:[#allocation7 + $0x14] ss:$8 sps:$4 sm:$0xff]   ;;  %v1372_v4 = vld [vmem:[#allocation7 + $0x10] ss:$8 sps:$4 sm:$0xff]   ;;  %v1373_v5 = vld [vmem:[#allocation7 + $0x24] ss:$8 sps:$4 sm:$0xff]  }
  0xbd   : > { %576 = vmatpush1.bf16.msra.mxu0 %v1369_v2  ;;  %v1375_v6 = vld [vmem:[#allocation7 + $0x20] ss:$8 sps:$4 sm:$0xff]   ;;  %v1376_v7 = vld [vmem:[#allocation7 + $0x34] ss:$8 sps:$4 sm:$0xff]   ;;  %v1378_v8 = vld [vmem:[#allocation7 + $0x30] ss:$8 sps:$4 sm:$0xff]  }
  0xbe   : > { %577 = vmatprep.subr.bf16.mxu0 %v1370_v3  ;;  %v1379_v9 = vld [vmem:[#allocation7 + $0x44] ss:$8 sps:$4 sm:$0xff]   ;;  %v1381_v10 = vld [vmem:[#allocation7 + $0x40] ss:$8 sps:$4 sm:$0xff]   ;;  %v1382_v11 = vld [vmem:[#allocation7 + $0x54] ss:$8 sps:$4 sm:$0xff]  }
  0xbf   : > { %v1395_v12 = vld [vmem:[#allocation8 + $0x40] sm:$0xff]   ;;  %v1384_v14 = vld [vmem:[#allocation7 + $0x50] ss:$8 sps:$4 sm:$0xff]   ;;  %v1397_v15 = vld [vmem:[#allocation8 + $0x48] sm:$0xff]   ;;  %v462_v38 = vshrl.u32 %v461_v37, 7  ;;  %s1651_s24 = smov 64  }
  0xc0   : > { %v1396_v13 = vld [vmem:[#allocation8] sm:$0xff]   ;;  %1238 = vmatprep.subr.bf16.mxu1 %v1395_v12  ;;  %v1398_v16 = vld [vmem:[#allocation8 + $0x8] sm:$0xff]   ;;  %v1399_v17 = vld [vmem:[#allocation8 + $0x50] sm:$0xff]   ;;  %s1652_s22 = smov 96   ;;  %s1653_s23 = smov 112   ;;  %vm1012_vm0 = vcmask 130048  }
  0xc1   : > { %578 = vmatpush1.bf16.msra.mxu0 %v1372_v4  ;;  %1239 = vmatpush3.bf16.msra.mxu1 %v1396_v13  ;;  %v1385_v18 = vld [vmem:[#allocation7 + $0x64] ss:$8 sps:$4 sm:$0xff]   ;;  %v1387_v19 = vld [vmem:[#allocation7 + $0x60] ss:$8 sps:$4 sm:$0xff]   ;;  %v1400_v20 = vld [vmem:[#allocation8 + $0x10] sm:$0xff]   ;;  %v463_v39 = vsub.s32 0, %v462_v38 }
  0xc2   : > { %579 = vmatprep.subr.bf16.mxu0 %v1373_v5  ;;  %1240 = vmatprep.subr.bf16.mxu1 %v1397_v15  ;;  %v1401_v21 = vld [vmem:[#allocation8 + $0x58] sm:$0xff]   ;;  %v1403_v25 = vld [vmem:[#allocation8 + $0x60] sm:$0xff]   ;;  %v1405_v28 = vld [vmem:[#allocation8 + $0x68] sm:$0xff]   ;;  %v467_v41 = vsub.s32 1, %v462_v38  ;;  %s1654_s16 = smov 16   ;;  %s1655_s21 = smov 32  }
  0xc3   : > { %v1388_v22 = vld [vmem:[#allocation7 + $0x74] ss:$8 sps:$4 sm:$0xff]   ;;  %v1390_v23 = vld [vmem:[#allocation7 + $0x70] ss:$8 sps:$4 sm:$0xff]   ;;  %v1391_v26 = vld [vmem:[%s1945_s29] sm:$0xff]   ;;  %s1656_s8 = smov 48  }
  0xc4   : > { %v1402_v24 = vld [vmem:[#allocation8 + $0x18] sm:$0xff]   ;;  %v1404_v27 = vld [vmem:[#allocation8 + $0x20] sm:$0xff]   ;;  %v1392_v29 = vld [vmem:[%s1945_s29 + $0x8] sm:$0xff]   ;;  %s1657_s14 = smov 80   ;;  %vm1014_vm1 = vcmask 261120   ;;  %vm1016_vm2 = vcmask 392192  }
  0xc5   : > { %580 = vmatpush1.bf16.msra.mxu0 %v1375_v6  ;;  %1241 = vmatpush3.bf16.msra.mxu1 %v1398_v16  ;;  %v1393_v30 = vld [vmem:[%s1945_s29 + $0x10] sm:$0xff]   ;;  %v1394_v31 = vld [vmem:[%s1945_s29 + $0x18] sm:$0xff]   ;;  %v1406_v32 = vld [vmem:[#allocation8 + $0x28] sm:$0xff]   ;;  %vm1018_vm3 = vcmask 523264   ;;  %vm1020_vm4 = vcmask 654336   ;;  %vm1022_vm5 = vcmask 785408  }
  0xc6   : > { %581 = vmatprep.subr.bf16.mxu0 %v1376_v7  ;;  %1242 = vmatprep.subr.bf16.mxu1 %v1399_v17  ;;  %v1407_v33 = vld [vmem:[#allocation8 + $0x70] sm:$0xff]   ;;  %v1409_v35 = vld [vmem:[#allocation8 + $0x78] sm:$0xff]   ;;  %v459_v40 = vld [vmem:[%s2077_s3] sm:$0x3]  ;;  %vm1024_vm6 = vcmask 916480   ;;  %s1233_s0 = sshll.u32 %s1720_s28, 7 }
  0xc7   : > { %v1408_v34 = vld [vmem:[#allocation8 + $0x30] sm:$0xff]   ;;  %v1410_v36 = vld [vmem:[#allocation8 + $0x38] sm:$0xff]   ;;  %v464_v42 = vrot.slane %v459_v40, %v463_v39  ;;  %v468_v43 = vrot.slane %v459_v40, %v467_v41  ;;  %s399_s20 = scalar_lea.vmem [#allocation11], %s1193_s2  ;;  %s1030_s12 = scalar_lea.sflag [#allocation4], %s1942_s9 }
  0xc8   : > { %s1043_s29 = sshll.u32 %s399_s20, 4  ;;  %p2133_p6 = scmp.ne.s32.totalorder %s2107_s13, 0  ;;  %s2033_s29 = int_to_ptr.vmem [resolvable:$true] %s1043_s29 }
  0xc9   : > { %582 = vmatpush1.bf16.msra.mxu0 %v1378_v8  ;;  %1243 = vmatpush3.bf16.msra.mxu1 %v1400_v20  ;;  %s1658_s28 = smov [#allocation11]  }
  0xca   : > { %583 = vmatprep.subr.bf16.mxu0 %v1379_v9  ;;  %1244 = vmatprep.subr.bf16.mxu1 %v1401_v21  ;;  %s1561_s2 = sshll.u32 %s1658_s28, 4  ;;  %s1562_s2 = int_to_ptr.vmem [resolvable:$false] %s1561_s2 }
  0xcb   : > { %s1563_s19 = scalar_lea.vmem %s1562_s2, 256  ;;  %p1564_p10 = scmp.lt.s32.totalorder %s2033_s29, %s1562_s2 }
  0xcd   : > { %584 = vmatpush1.bf16.msra.mxu0 %v1381_v10  ;;  %1245 = vmatpush3.bf16.msra.mxu1 %v1402_v24 }
  0xce   : > { %585 = vmatprep.subr.bf16.mxu0 %v1382_v11  ;;  %1246 = vmatprep.subr.bf16.mxu1 %v1403_v25 }
  0xd1   : > { %586 = vmatpush1.bf16.msra.mxu0 %v1384_v14  ;;  %1247 = vmatpush3.bf16.msra.mxu1 %v1404_v27 }
  0xd2   : > { %587 = vmatprep.subr.bf16.mxu0 %v1385_v18  ;;  %1248 = vmatprep.subr.bf16.mxu1 %v1405_v28 }
  0xd5   : > { %588 = vmatpush1.bf16.msra.mxu0 %v1387_v19  ;;  %1249 = vmatpush3.bf16.msra.mxu1 %v1406_v32 }
  0xd6   : > { %589 = vmatprep.subr.bf16.mxu0 %v1388_v22  ;;  %1250 = vmatprep.subr.bf16.mxu1 %v1407_v33 }
  0xd9   : > { %590 = vmatpush1.bf16.msra.mxu0 %v1390_v23  ;;  %1251 = vmatpush3.bf16.msra.mxu1 %v1408_v34 }
  0xda   : > { %1252 = vmatprep.subr.bf16.mxu1 %v1409_v35 }
  0xdc   : > { %608 = vmatmul.mubr.bf16.vlgmr.msra.gmra.mrb[0].mxu0 %v1391_v26 }
  0xdd   : > { %617 = vmatprep.mubr.bf16.mxu0 %v1650_v0  ;;  %1253 = vmatpush3.bf16.msra.mxu1 %v1410_v36 }
  0xe4   : > { %618 = vmatmul.mubr.bf16.gmra.mrb[4].mxu0 %v1392_v29 }
  0xe5   : > { %627 = vmatprep.mubr.bf16.mxu0 %v1650_v0 }
  0xec   : > { %628 = vmatmul.mubr.bf16.gmra.mrb[8].mxu0 %v1393_v30 }
  0xed   : > { %637 = vmatprep.mubr.bf16.mxu0 %v1650_v0 }
  0xf4   : > { %638 = vmatmul.mubr.bf16.gmra.mrb[12].mxu0 %v1394_v31 }
 0x1af   : > { %v609_v44 = vpop.f32.mrb[0].mxu0 }
 0x1b0   : > { %v610_v45 = vadd.f32 %v609_v44, %v464_v42  ;;  %v611_v46 = vpop.f32.mrb[1].mxu0  ;;  %v849_v44 = vld [vmem:[%s1952_s10 + $0x8] sm:$0xff] }
 0x1b1   : > { %v612_v47 = vadd.f32 %v611_v46, %v468_v43  ;;  %v613_v48 = vpop.f32.mrb[2].mxu0 }
 0x1b2   : > { %v614_v49 = vadd.f32 %v613_v48, %v464_v42  ;;  %v615_v50 = vpop.f32.mrb[3].mxu0  ;;  %v648_v52 = vmax.f32 %v610_v45, 0.0 }
 0x1b3   : > { %v616_v51 = vadd.f32 %v615_v50, %v468_v43  ;;  %v649_v54 = vmax.f32 %v612_v47, 0.0 }
 0x1b4   : > { %v650_v53 = vmax.f32 %v614_v49, 0.0 }
 0x1b5   : > { %v651_v55 = vmax.f32 %v616_v51, 0.0 }
 0x1b6   : > { %v664_v56 = vpack.c.bf16 %v650_v53, %v648_v52 }
 0x1b7   : > { %v619_v57 = vpop.f32.mrb[4].mxu0  ;;  %v665_v58 = vpack.c.bf16 %v651_v55, %v649_v54  ;;  %v850_v54 = vld [vmem:[%s1952_s10 + $0x10] sm:$0xff] }
 0x1b8   : > { %v620_v59 = vadd.f32 %v619_v57, %v464_v42  ;;  %v621_v60 = vpop.f32.mrb[5].mxu0  ;;  %v851_v57 = vld [vmem:[%s1952_s10 + $0x18] sm:$0xff] }
 0x1b9   : > { %v622_v61 = vadd.f32 %v621_v60, %v468_v43  ;;  %v623_v62 = vpop.f32.mrb[6].mxu0  ;;  %807 = vmatprep.mubr.bf16.mxu1 %v665_v58 }
 0x1ba   : > { %v624_v63 = vadd.f32 %v623_v62, %v464_v42  ;;  %v625_v0 = vpop.f32.mrb[7].mxu0  ;;  %808 = vmatmul.mubr.bf16.vlgmr.msra.gmra.mrb[0].mxu1 %v664_v56  ;;  %v652_v2 = vmax.f32 %v620_v59, 0.0 }
 0x1bb   : > { %v626_v1 = vadd.f32 %v625_v0, %v468_v43  ;;  %v653_v4 = vmax.f32 %v622_v61, 0.0 }
 0x1bc   : > { %v654_v3 = vmax.f32 %v624_v63, 0.0 }
 0x1bd   : > { %v655_v5 = vmax.f32 %v626_v1, 0.0 }
 0x1be   : > { %v666_v6 = vpack.c.bf16 %v654_v3, %v652_v2 }
 0x1bf   : > { %v667_v7 = vpack.c.bf16 %v655_v5, %v653_v4  ;;  %v629_v8 = vpop.f32.mrb[8].mxu0  ;;  %v852_v4 = vld [vmem:[%s1952_s10 + $0x20] sm:$0xff] }
 0x1c0   : > { %v630_v9 = vadd.f32 %v629_v8, %v464_v42  ;;  %v631_v10 = vpop.f32.mrb[9].mxu0 }
 0x1c1   : > { %v632_v11 = vadd.f32 %v631_v10, %v468_v43  ;;  %v633_v12 = vpop.f32.mrb[10].mxu0  ;;  %815 = vmatprep.mubr.bf16.mxu1 %v667_v7  ;;  %v853_v7 = vld [vmem:[%s1952_s10 + $0x28] sm:$0xff] }
 0x1c2   : > { %v634_v13 = vadd.f32 %v633_v12, %v464_v42  ;;  %v635_v14 = vpop.f32.mrb[11].mxu0  ;;  %816 = vmatmul.mubr.bf16.gmra.mrb[4].mxu1 %v666_v6  ;;  %v656_v16 = vmax.f32 %v630_v9, 0.0 }
 0x1c3   : > { %v636_v15 = vadd.f32 %v635_v14, %v468_v43  ;;  %v657_v18 = vmax.f32 %v632_v11, 0.0 }
 0x1c4   : > { %v658_v17 = vmax.f32 %v634_v13, 0.0 }
 0x1c5   : > { %v659_v19 = vmax.f32 %v636_v15, 0.0 }
 0x1c6   : > { %v668_v20 = vpack.c.bf16 %v658_v17, %v656_v16 }
 0x1c7   : > { %v669_v21 = vpack.c.bf16 %v659_v19, %v657_v18  ;;  %v639_v22 = vpop.f32.mrb[12].mxu0  ;;  %v854_v19 = vld [vmem:[%s1952_s10 + $0x30] sm:$0xff] }
 0x1c8   : > { %v640_v23 = vadd.f32 %v639_v22, %v464_v42  ;;  %v641_v24 = vpop.f32.mrb[13].mxu0  ;;  %v855_v22 = vld [vmem:[%s1952_s10 + $0x38] sm:$0xff] }
 0x1c9   : > { %v642_v25 = vadd.f32 %v641_v24, %v468_v43  ;;  %v643_v26 = vpop.f32.mrb[14].mxu0  ;;  %823 = vmatprep.mubr.bf16.mxu1 %v669_v21 }
 0x1ca   : > { %v644_v27 = vadd.f32 %v643_v26, %v464_v42  ;;  %v645_v28 = vpop.f32.mrb[15].mxu0  ;;  %824 = vmatmul.mubr.bf16.gmra.mrb[8].mxu1 %v668_v20  ;;  %v660_v30 = vmax.f32 %v640_v23, 0.0  ;;  %v1215_v42 = vld [vmem:[%s2079_s5] ss:$0 sm:$0xff] }
 0x1cb   : > { %v646_v29 = vadd.f32 %v645_v28, %v468_v43  ;;  %v661_v32 = vmax.f32 %v642_v25, 0.0  ;;  %v848_v26 = vld [vmem:[%s1952_s10] sm:$0xff]  ;;  %s2031_s10 = scalar_lea.hbm %s2081_s7, %s1233_s0 }
 0x1cc   : > { %v662_v31 = vmax.f32 %v644_v27, 0.0 }
 0x1cd   : > { %v663_v33 = vmax.f32 %v646_v29, 0.0 }
 0x1ce   : > { %v670_v34 = vpack.c.bf16 %v662_v31, %v660_v30 }
 0x1cf   : > { %v671_v35 = vpack.c.bf16 %v663_v33, %v661_v32 }
 0x1d1   : > { %831 = vmatprep.mubr.bf16.mxu1 %v671_v35 }
 0x1d2   : > { %832 = vmatmul.mubr.bf16.gmra.mrb[12].mxu1 %v670_v34 }
 0x28d   : > { %v1254_v36 = vpop.f32.mrb[0].mxu1 }
 0x28e   : > { %v1255_v37 = vpop.f32.mrb[1].mxu1 }
 0x28f   : > { %v1256_v38 = vadd.f32 %v1255_v37, %v1254_v36  ;;  %v1257_v39 = vpop.f32.mrb[2].mxu1 }
 0x290   : > { %v1258_v40 = vpop.f32.mrb[3].mxu1 }
 0x291   : > { %v1259_v41 = vadd.f32 %v1258_v40, %v1257_v39  ;;  %v810_v16 = vadd.f32 %v1256_v38, %v1215_v42 }
 0x293   : > { %v813_v43 = vadd.f32 %v1259_v41, %v1215_v42  ;;  %v840_v23 = vmax.f32 %v810_v16, 0.0 }
 0x295   : > { %v841_v45 = vmax.f32 %v813_v43, 0.0  ;;  %v1260_v46 = vpop.f32.mrb[4].mxu1  ;;  %v856_v28 = vmul.f32 %v848_v26, %v840_v23 }
 0x296   : > { %v1261_v47 = vpop.f32.mrb[5].mxu1 }
 0x297   : > { %v1262_v48 = vadd.f32 %v1261_v47, %v1260_v46  ;;  %v1263_v49 = vpop.f32.mrb[6].mxu1  ;;  %v857_v50 = vmul.f32 %v849_v44, %v841_v45 }
 0x298   : > { %v1264_v51 = vpop.f32.mrb[7].mxu1 }
 0x299   : > { %v818_v52 = vadd.f32 %v1262_v48, %v1215_v42  ;;  %v1265_v53 = vadd.f32 %v1264_v51, %v1263_v49  ;;  %874 = vrot.lane.b32.xlu0 %v857_v50, %s1651_s24 }
 0x29b   : > { %v842_v55 = vmax.f32 %v818_v52, 0.0  ;;  %v821_v56 = vadd.f32 %v1265_v53, %v1215_v42 }
 0x29d   : > { %v843_v58 = vmax.f32 %v821_v56, 0.0  ;;  %v1266_v59 = vpop.f32.mrb[8].mxu1  ;;  %v858_v60 = vmul.f32 %v850_v54, %v842_v55 }
 0x29e   : > { %v1267_v61 = vpop.f32.mrb[9].mxu1 }
 0x29f   : > { %v1268_v62 = vadd.f32 %v1267_v61, %v1266_v59  ;;  %v1269_v63 = vpop.f32.mrb[10].mxu1  ;;  %876 = vrot.lane.b32.xlu0 %v858_v60, %s1651_s24  ;;  %v859_v0 = vmul.f32 %v851_v57, %v843_v58 }
 0x2a0   : > { %v1270_v1 = vpop.f32.mrb[11].mxu1 }
 0x2a1   : > { %v826_v2 = vadd.f32 %v1268_v62, %v1215_v42  ;;  %v1271_v3 = vadd.f32 %v1270_v1, %v1269_v63  ;;  %878 = vrot.lane.b32.xlu1 %v859_v0, %s1651_s24 }
 0x2a3   : > { %v844_v5 = vmax.f32 %v826_v2, 0.0  ;;  %v829_v6 = vadd.f32 %v1271_v3, %v1215_v42 }
 0x2a5   : > { %v845_v8 = vmax.f32 %v829_v6, 0.0  ;;  %v1272_v9 = vpop.f32.mrb[12].mxu1  ;;  %v860_v10 = vmul.f32 %v852_v4, %v844_v5 }
 0x2a6   : > { %v1273_v11 = vpop.f32.mrb[13].mxu1 }
 0x2a7   : > { %v1274_v12 = vadd.f32 %v1273_v11, %v1272_v9  ;;  %v1275_v13 = vpop.f32.mrb[14].mxu1  ;;  %880 = vrot.lane.b32.xlu1 %v860_v10, %s1651_s24  ;;  %v861_v14 = vmul.f32 %v853_v7, %v845_v8 }
 0x2a8   : > { %v1276_v15 = vpop.f32.mrb[15].mxu1 }
 0x2a9   : > { %v834_v17 = vadd.f32 %v1274_v12, %v1215_v42  ;;  %v1277_v18 = vadd.f32 %v1276_v15, %v1275_v13  ;;  %882 = vrot.lane.b32.xlu0 %v861_v14, %s1651_s24 }
 0x2ab   : > { %v846_v20 = vmax.f32 %v834_v17, 0.0  ;;  %v837_v21 = vadd.f32 %v1277_v18, %v1215_v42 }
 0x2ad   : > { %v847_v24 = vmax.f32 %v837_v21, 0.0  ;;  %v862_v25 = vmul.f32 %v854_v19, %v846_v20 }
 0x2af   : > { %884 = vrot.lane.b32.xlu1 %v862_v25, %s1651_s24  ;;  %v863_v27 = vmul.f32 %v855_v22, %v847_v24 }
 0x2b1   : > { %886 = vrot.lane.b32.xlu0 %v863_v27, %s1651_s24 }
 0x2b3   : > { %872 = vrot.lane.b32.xlu1 %v856_v28, %s1651_s24 }
 0x30b   : > { %v875_v29 = vpop.permute.xlu0 %874 }
 0x30c   : > { %v897_v30 = vadd.f32 %v875_v29, %v857_v50 }
 0x30e   : > { %914 = vrot.lane.b32.xlu0 %v897_v30, %s1652_s22 }
 0x311   : > { %v877_v31 = vpop.permute.xlu0 %876 }
 0x312   : > { %v898_v32 = vadd.f32 %v877_v31, %v858_v60 }
 0x313   : > { %v879_v33 = vpop.permute.xlu1 %878 }
 0x314   : > { %v899_v34 = vadd.f32 %v879_v33, %v859_v0  ;;  %916 = vrot.lane.b32.xlu1 %v898_v32, %s1652_s22 }
 0x316   : > { %918 = vrot.lane.b32.xlu0 %v899_v34, %s1652_s22 }
 0x319   : > { %v881_v35 = vpop.permute.xlu1 %880 }
 0x31a   : > { %v900_v36 = vadd.f32 %v881_v35, %v860_v10 }
 0x31b   : > { %v883_v37 = vpop.permute.xlu0 %882 }
 0x31c   : > { %v901_v38 = vadd.f32 %v883_v37, %v861_v14  ;;  %920 = vrot.lane.b32.xlu1 %v900_v36, %s1652_s22 }
 0x31e   : > { %922 = vrot.lane.b32.xlu0 %v901_v38, %s1652_s22 }
 0x321   : > { %v885_v39 = vpop.permute.xlu1 %884 }
 0x322   : > { %v902_v40 = vadd.f32 %v885_v39, %v862_v25  ;;  %v1026_v25 = vld [vmem:[%s1969_s11] sm:$0xff]  ;;  %s1557_s11 = scalar_lea.vmem %s2033_s29, 128 }
 0x323   : > { %v887_v41 = vpop.permute.xlu0 %886  ;;  %p1558_p0 = scmp.ne.s32.totalorder %s2033_s29, %s1557_s11  ;;  %p1565_p1 = scmp.lt.s32.totalorder %s1563_s19, %s1557_s11 }
 0x324   : > { %v903_v42 = vadd.f32 %v887_v41, %v863_v27  ;;  %924 = vrot.lane.b32.xlu1 %v902_v40, %s1652_s22 }
 0x325   : > { %v873_v43 = vpop.permute.xlu1 %872  ;;  %p1559_p2 = pnand %p1558_p0, %p2133_p6  ;;  %p1566_p5 = por %p1565_p1, %p1564_p10 }
 0x326   : > { %v896_v44 = vadd.f32 %v873_v43, %v856_v28  ;;  %926 = vrot.lane.b32.xlu0 %v903_v42, %s1652_s22 }
 0x327   : > { %p1560_p9 = pneg %p1559_p2 }
 0x328   : > { %912 = vrot.lane.b32.xlu1 %v896_v44, %s1652_s22 }
 0x329   : > { %p1567_p11 = pnand %p1566_p5, %p1560_p9 }
 0x380   : > { %v915_v45 = vpop.permute.xlu0 %914 }
 0x381   : > { %v937_v46 = vadd.f32 %v915_v45, %v897_v30 }
 0x383   : > { %954 = vrot.lane.b32.xlu0 %v937_v46, %s1653_s23 }
 0x386   : > { %v917_v47 = vpop.permute.xlu1 %916 }
 0x387   : > { %v938_v48 = vadd.f32 %v917_v47, %v898_v32 }
 0x388   : > { %v919_v49 = vpop.permute.xlu0 %918 }
 0x389   : > { %v939_v50 = vadd.f32 %v919_v49, %v899_v34  ;;  %956 = vrot.lane.b32.xlu1 %v938_v48, %s1653_s23 }
 0x38b   : > { %958 = vrot.lane.b32.xlu0 %v939_v50, %s1653_s23 }
 0x38e   : > { %v921_v51 = vpop.permute.xlu1 %920 }
 0x38f   : > { %v940_v52 = vadd.f32 %v921_v51, %v900_v36 }
 0x390   : > { %v923_v53 = vpop.permute.xlu0 %922 }
 0x391   : > { %v941_v54 = vadd.f32 %v923_v53, %v901_v38  ;;  %960 = vrot.lane.b32.xlu1 %v940_v52, %s1653_s23 }
 0x393   : > { %962 = vrot.lane.b32.xlu0 %v941_v54, %s1653_s23 }
 0x396   : > { %v925_v55 = vpop.permute.xlu1 %924 }
 0x397   : > { %v942_v56 = vadd.f32 %v925_v55, %v902_v40 }
 0x398   : > { %v927_v57 = vpop.permute.xlu0 %926 }
 0x399   : > { %v943_v58 = vadd.f32 %v927_v57, %v903_v42  ;;  %964 = vrot.lane.b32.xlu1 %v942_v56, %s1653_s23 }
 0x39a   : > { %v913_v59 = vpop.permute.xlu1 %912 }
 0x39b   : > { %v936_v60 = vadd.f32 %v913_v59, %v896_v44  ;;  %966 = vrot.lane.b32.xlu0 %v943_v58, %s1653_s23 }
 0x39d   : > { %952 = vrot.lane.b32.xlu1 %v936_v60, %s1653_s23 }
 0x3f5   : > { %v955_v61 = vpop.permute.xlu0 %954 }
 0x3f6   : > { %v977_v62 = vadd.f32 %v955_v61, %v937_v46 }
 0x3f8   : > { %985 = vrot.lane.b32.xlu0 %v977_v62, %s1654_s16 }
 0x3fb   : > { %v957_v63 = vpop.permute.xlu1 %956 }
 0x3fc   : > { %v978_v0 = vadd.f32 %v957_v63, %v938_v48 }
 0x3fd   : > { %v959_v1 = vpop.permute.xlu0 %958 }
 0x3fe   : > { %v979_v2 = vadd.f32 %v959_v1, %v939_v50  ;;  %989 = vrot.lane.b32.xlu1 %v978_v0, %s1655_s21 }
 0x400   : > { %993 = vrot.lane.b32.xlu0 %v979_v2, %s1656_s8 }
 0x403   : > { %v961_v3 = vpop.permute.xlu1 %960 }
 0x404   : > { %v980_v4 = vadd.f32 %v961_v3, %v940_v52 }
 0x405   : > { %v963_v5 = vpop.permute.xlu0 %962 }
 0x406   : > { %v981_v6 = vadd.f32 %v963_v5, %v941_v54  ;;  %997 = vrot.lane.b32.xlu1 %v980_v4, %s1651_s24 }
 0x408   : > { %1001 = vrot.lane.b32.xlu0 %v981_v6, %s1657_s14 }
 0x40b   : > { %v965_v7 = vpop.permute.xlu1 %964 }
 0x40c   : > { %v982_v8 = vadd.f32 %v965_v7, %v942_v56 }
 0x40d   : > { %v967_v9 = vpop.permute.xlu0 %966 }
 0x40e   : > { %v983_v10 = vadd.f32 %v967_v9, %v943_v58  ;;  %1005 = vrot.lane.b32.xlu1 %v982_v8, %s1652_s22 }
 0x40f   : > { %v953_v11 = vpop.permute.xlu1 %952 }
 0x410   : > { %1009 = vrot.lane.b32.xlu0 %v983_v10, %s1653_s23  ;;  %v976_v13 = vadd.f32 %v953_v11, %v936_v60 }
 0x46a   : > { %v986_v12 = vpop.permute.xlu0 %985 }
 0x46b   : > { %v1013_v15 = vsel %vm1012_vm0, %v976_v13, %v986_v12 }
 0x470   : > { %v990_v14 = vpop.permute.xlu1 %989 }
 0x471   : > { %v1015_v16 = vsel %vm1014_vm1, %v1013_v15, %v990_v14 }
 0x472   : > { %v994_v17 = vpop.permute.xlu0 %993 }
 0x473   : > { %v1017_v19 = vsel %vm1016_vm2, %v1015_v16, %v994_v17 }
 0x478   : > { %v998_v18 = vpop.permute.xlu1 %997 }
 0x479   : > { %v1019_v20 = vsel %vm1018_vm3, %v1017_v19, %v998_v18 }
 0x47a   : > { %v1002_v21 = vpop.permute.xlu0 %1001 }
 0x47b   : > { %v1021_v22 = vsel %vm1020_vm4, %v1019_v20, %v1002_v21 }
 0x480   : > { %v1006_v23 = vpop.permute.xlu1 %1005 }
 0x481   : > { %v1023_v24 = vsel %vm1022_vm5, %v1021_v22, %v1006_v23 }
 0x482   : > { %v1010_v26 = vpop.permute.xlu0 %1009 }
 0x483   : > { %v1025_v27 = vsel %vm1024_vm6, %v1023_v24, %v1010_v26 }
 0x484   : > { %v1027_v28 = vadd.f32 %v1026_v25, %v1025_v27 }
 0x486   : > { %1028 = vst [vmem:[%s399_s20] sm:$0xff] %v1027_v28 }
 0x487   : > { %1570 = shalt.err (!%p1567_p11)
}
 0x488   : > { %s1571_s9 = scalar_lea.hbm %s2031_s10, 128  ;;  %s1575_s24 = scalar_lea.hbm %s2081_s7, 512 }
 0x489   : > { %p1572_p4 = scmp.ne.s32.totalorder %s2031_s10, %s1571_s9  ;;  %p1576_p13 = scmp.lt.u32.totalorder %s2031_s10, %s2081_s7 }
 0x48a   : > { %p1577_p3 = scmp.lt.u32.totalorder %s1575_s24, %s1571_s9  ;;  %p1579_p0 = scmp.lt.u32.totalorder %s1571_s9, %s2031_s10 }
 0x48b   : > { %p1573_p12 = pnand %p1572_p4, %p2133_p6 }
 0x48c   : > { %p1578_p8 = por %p1577_p3, %p1576_p13 }
 0x48d   : > { %p1574_p7 = pneg %p1573_p12 }
 0x48e   : > { %p1580_p2 = por %p1579_p0, %p1578_p8 }
 0x490   : > { %p1581_p9 = pnand %p1580_p2, %p1574_p7 }
 0x492   : > { %1584 = shalt.err (!%p1581_p9)
}
 0x493   : > { %1292 = dma.vmem_to_hbm [thread:$0]  (%p2133_p6), %s2033_s29, 128, %s2031_s10, %s1030_s12  }
 0x494 PF: > { %s2134_s16 = sld [smem:[#allocation18_spill]]  ;;  %s2135_s21 = sld [smem:[#allocation21_spill]] }
 0x495   : > { %p1320_p10 = scmp.ge.s32.totalorder %s1639_s27, 2 }
 0x49a   : > { %s1055_s8 = sand.u32 1, %s2134_s16   ;;  %p2136_p1 = scmp.ne.s32.totalorder %s2135_s21, 0 }
 0x49b   : > { %s1056_s14 = scalar_lea.sflag [#allocation4], %s1055_s8 }
 0x49c   : > { %p1312_p5 = pnand %p1320_p10, %p2136_p1 }
 0x49e   : > { %1622 = dma.done.wait (!%p1312_p5), %s1056_s14, 128  }
 0x49f   : > { %1624 = vsyncadd (!%p1312_p5), %s1056_s14, 4294967168  ;;  %s2137_s27 = sld [smem:[#allocation19_spill]]  ;;  %s2138_s0 = sld [smem:[#allocation20_spill]] }
 0x4a0   : > { %s2139_s24 = smov %s1631_s25  ;;  %s2140_s25 = smov %s1635_s26 }
 0x4a5   : > { %p24_p11 = scmp.ge.s32.totalorder %s2137_s27, 6   ;;  %s2141_s26 = smov %s2138_s0 }
 0x4a7   :  { %26 = sbr.rel (!%p24_p11) target bundleno = 11 (0xb), region = 125 }
 0x4ae   :  { %1061 = vsyncpa [#allocation3], 1 }
 0x4af   :  { %1063 = vsyncpa [#allocation3 + $0x1], 1 }
 0x4b0   :  { %1064 = vsyncpa [#allocation6], 1 }
 0x4b1   :  { %1066 = vsyncpa [#allocation6 + $0x1], 1 }
 0x4b2   :  { %1067 = vsyncpa [#allocation9], 1 }
 0x4b3   :  { %1068 = vsyncpa [#allocation4], 1 }
 0x4b4   :  { %1070 = vsyncpa [#allocation4 + $0x1], 1 }

</bundles_post_ra>
